<compile_context>
chip_gen: v7x
topology: tpu7x:2x2x1
jax: 0.10.0
libtpu: 0.0.40
codegen_flags: <defaults>
</compile_context>

<pallas_src>
import jax
import jax.numpy as jnp
from jax.experimental import pallas as pl
from jax.experimental.pallas import tpu as pltpu


def _energy_partials_kernel(yp_ref, yt_ref, out_h_ref, out_s_ref):
    """Accumulate lane-parallel (1, 128) partial sums of Huber and smoothness terms.

    Grid = (num_slices, steps_per_slice). Axis 0 is "parallel" (core-shardable);
    axis 1 is the reduction axis ("arbitrary"): the output blocks keep the same
    block index across it, so they stay resident in VMEM and act as accumulators.
    """
    k = pl.program_id(1)

    @pl.when(k == 0)
    def _():
        out_h_ref[...] = jnp.zeros_like(out_h_ref)
        out_s_ref[...] = jnp.zeros_like(out_s_ref)

    yp = yp_ref[...]
    yt = yt_ref[...]
    if yp.dtype != jnp.float32:          # trace-time check: no cast ops for f32 inputs
        yp = yp.astype(jnp.float32)
    if yt.dtype != jnp.float32:
        yt = yt.astype(jnp.float32)

    # Huber loss, delta = 1.0, branch-free:
    #   c = min(|d|, 1); huber = c * (|d| - 0.5 * c)
    #   |d| <= 1 -> 0.5*d^2 ; |d| > 1 -> |d| - 0.5
    diff = yp - yt
    adiff = jnp.abs(diff)
    c = jnp.minimum(adiff, 1.0)
    huber = c * (adiff - 0.5 * c)

    # Smoothness: |y_pred - round(y_pred)| (round-half-to-even, same as torch.round).
    smooth = jnp.abs(yp - jnp.round(yp))

    # Per-step sublane reduce only; the expensive cross-lane reduce is deferred to
    # the wrapper (once per call). 128 lane-parallel partials also improve f32
    # accumulation accuracy for large tensors.
    out_h_ref[...] += jnp.sum(huber, axis=0, keepdims=True)
    out_s_ref[...] += jnp.sum(smooth, axis=0, keepdims=True)


def custom_energy_loss(y_pred, y_true, *, tile_rows=2048, num_slices=2):
    """Pallas implementation of CustomEnergyLoss.forward.

    Returns (total_loss, {'base_loss', 'smoothness_loss', 'total_loss'}) with the
    aux entries as JAX scalars (jit-friendly; no blocking .item()-style syncs).
    """
    assert y_pred.shape == y_true.shape
    lanes = 128
    n = int(y_pred.size)
    assert n > 0

    rows_needed = pl.cdiv(n, lanes)
    # Cap the tile so tiny inputs are not over-padded; keep it a multiple of 8
    # sublanes. Default 2048x128 f32 = 1 MiB/input/step.
    tr = min(tile_rows, max(8, pl.cdiv(rows_needed, num_slices)))
    tr = pl.cdiv(tr, 8) * 8
    steps_per_slice = pl.cdiv(rows_needed, num_slices * tr)
    padded_rows = num_slices * steps_per_slice * tr
    padded_n = padded_rows * lanes

    yp = jnp.ravel(y_pred)
    yt = jnp.ravel(y_true)
    if padded_n != n:
        # Zero padding contributes 0 to both sums (huber(0,0)=0, |0-round(0)|=0);
        # the means below divide by the true n.
        yp = jnp.pad(yp, (0, padded_n - n))
        yt = jnp.pad(yt, (0, padded_n - n))
    yp2 = yp.reshape(padded_rows, lanes)
    yt2 = yt.reshape(padded_rows, lanes)

    in_spec = pl.BlockSpec((tr, lanes), lambda s, k: (s * steps_per_slice + k, 0))
    out_spec = pl.BlockSpec((None, 1, lanes), lambda s, k: (s, 0, 0))
    out_shape = jax.ShapeDtypeStruct((num_slices, 1, lanes), jnp.float32)

    bytes_per_elem = yp2.dtype.itemsize + yt2.dtype.itemsize
    cost = pl.CostEstimate(
        flops=10 * padded_n,
        transcendentals=0,
        bytes_accessed=bytes_per_elem * padded_n,
    )

    part_h, part_s = pl.pallas_call(
        _energy_partials_kernel,
        out_shape=(out_shape, out_shape),
        grid_spec=pltpu.PrefetchScalarGridSpec(
            num_scalar_prefetch=0,
            grid=(num_slices, steps_per_slice),
            in_specs=[in_spec, in_spec],
            out_specs=[out_spec, out_spec],
        ),
        compiler_params=pltpu.CompilerParams(
            dimension_semantics=("parallel", "arbitrary")),
        cost_estimate=cost,
    )(yp2, yt2)

    # Single cross-lane reduce + scaling, done once outside the grid loop.
    inv_n = jnp.float32(1.0 / n)
    base_loss = jnp.sum(part_h) * inv_n
    smoothness_loss = jnp.sum(part_s) * inv_n
    total_loss = base_loss + 0.001 * smoothness_loss

    # TODO(synk): PyTorch returns Python floats via .item(); we keep JAX scalars so
    # the function stays jittable and avoids three blocking host round-trips.
    aux = {
        "base_loss": base_loss,
        "smoothness_loss": smoothness_loss,
        "total_loss": total_loss,
    }
    return total_loss, aux


def _reference(y_pred, y_true):
    diff = y_pred - y_true
    adiff = jnp.abs(diff)
    huber = jnp.where(adiff <= 1.0, 0.5 * diff * diff, adiff - 0.5)
    base = jnp.mean(huber)
    smooth = jnp.mean(jnp.abs(y_pred - jnp.round(y_pred)))
    return base + 0.001 * smooth, base, smooth


if __name__ == "__main__":
    key = jax.random.PRNGKey(0)
    k1, k2, k3, k4 = jax.random.split(key, 4)

    # Small NCHW-shaped prediction/target pair (e.g. per-pixel power levels).
    shape = (2, 4, 16, 16)
    y_pred = jax.random.normal(k1, shape, dtype=jnp.float32) * 3.0
    y_true = jax.random.normal(k2, shape, dtype=jnp.float32) * 3.0

    total_loss, aux = custom_energy_loss(y_pred, y_true)
    total_loss = jax.block_until_ready(total_loss)

    ref_total, ref_base, ref_smooth = _reference(y_pred, y_true)
    assert abs(float(total_loss) - float(ref_total)) < 1e-5
    assert abs(float(aux["base_loss"]) - float(ref_base)) < 1e-5
    assert abs(float(aux["smoothness_loss"]) - float(ref_smooth)) < 1e-5

    # Also exercise the zero-padding path with an odd, non-128-divisible shape.
    odd_shape = (3, 5, 7)
    y_pred2 = jax.random.normal(k3, odd_shape, dtype=jnp.float32) * 3.0
    y_true2 = jax.random.normal(k4, odd_shape, dtype=jnp.float32) * 3.0
    total2, aux2 = custom_energy_loss(y_pred2, y_true2)
    total2 = jax.block_until_ready(total2)
    ref_total2, ref_base2, ref_smooth2 = _reference(y_pred2, y_true2)
    assert abs(float(total2) - float(ref_total2)) < 1e-5
    assert abs(float(aux2["base_loss"]) - float(ref_base2)) < 1e-5
    assert abs(float(aux2["smoothness_loss"]) - float(ref_smooth2)) < 1e-5

    print("KERNEL_OK")
</pallas_src>

<mosaic_0001>
module attributes {stable_mosaic.version = 11 : i64} {
  func.func @_energy_partials_kernel(%arg0: i32, %arg1: i32, %arg2: memref<8x128xf32, #tpu.memory_space<vmem>>, %arg3: memref<8x128xf32, #tpu.memory_space<vmem>>, %arg4: memref<1x1x128xf32, #tpu.memory_space<vmem>>, %arg5: memref<1x1x128xf32, #tpu.memory_space<vmem>>) attributes {dimension_semantics = [#tpu.dimension_semantics<parallel>, #tpu.dimension_semantics<arbitrary>], iteration_bounds = array<i64: 2, 1>, scalar_prefetch = 0 : i64, scratch_operands = 0 : i64, tpu.core_type = #tpu.core_type<tc>, window_params = [{transform_indices = @transform_0, window_bounds = array<i64: 8, 128>}, {transform_indices = @transform_1, window_bounds = array<i64: 8, 128>}, {transform_indices = @transform_2, window_bounds = array<i64: 1, 1, 128>}, {transform_indices = @transform_3, window_bounds = array<i64: 1, 1, 128>}]} {
    %c0_i32 = arith.constant 0 : i32
    %0 = arith.cmpi eq, %arg1, %c0_i32 : i32
    %1 = arith.extui %0 : i1 to i32
    %c0_i32_0 = arith.constant 0 : i32
    %2 = arith.cmpi ne, %1, %c0_i32_0 : i32
    scf.if %2 {
      %cst_19 = arith.constant 0.000000e+00 : f32
      %32 = vector.broadcast %cst_19 : f32 to vector<1x128xf32>
      %c0_20 = arith.constant 0 : index
      %c0_21 = arith.constant 0 : index
      %c0_22 = arith.constant 0 : index
      %33 = vector.load %arg4[%c0_20, %c0_21, %c0_22] : memref<1x1x128xf32, #tpu.memory_space<vmem>>, vector<1x1x128xf32>
      %34 = vector.shape_cast %33 : vector<1x1x128xf32> to vector<1x128xf32>
      %35 = vector.shape_cast %32 : vector<1x128xf32> to vector<1x1x128xf32>
      tpu.vector_store %arg4[%c0_20, %c0_21, %c0_22], %35 {strides = array<i32>} : memref<1x1x128xf32, #tpu.memory_space<vmem>>, vector<1x1x128xf32>,
      %cst_23 = arith.constant 0.000000e+00 : f32
      %36 = vector.broadcast %cst_23 : f32 to vector<1x128xf32>
      %c0_24 = arith.constant 0 : index
      %c0_25 = arith.constant 0 : index
      %c0_26 = arith.constant 0 : index
      %37 = vector.load %arg5[%c0_24, %c0_25, %c0_26] : memref<1x1x128xf32, #tpu.memory_space<vmem>>, vector<1x1x128xf32>
      %38 = vector.shape_cast %37 : vector<1x1x128xf32> to vector<1x128xf32>
      %39 = vector.shape_cast %36 : vector<1x128xf32> to vector<1x1x128xf32>
      tpu.vector_store %arg5[%c0_24, %c0_25, %c0_26], %39 {strides = array<i32>} : memref<1x1x128xf32, #tpu.memory_space<vmem>>, vector<1x1x128xf32>,
    } else {
    }
    %c0 = arith.constant 0 : index
    %c0_1 = arith.constant 0 : index
    %3 = vector.load %arg2[%c0, %c0_1] : memref<8x128xf32, #tpu.memory_space<vmem>>, vector<8x128xf32>
    %c0_2 = arith.constant 0 : index
    %c0_3 = arith.constant 0 : index
    %4 = vector.load %arg3[%c0_2, %c0_3] : memref<8x128xf32, #tpu.memory_space<vmem>>, vector<8x128xf32>
    %5 = arith.subf %3, %4 : vector<8x128xf32>
    %6 = math.absf %5 : vector<8x128xf32>
    %cst = arith.constant 1.000000e+00 : f32
    %7 = vector.broadcast %cst : f32 to vector<8x128xf32>
    %8 = arith.minimumf %6, %7 : vector<8x128xf32>
    %cst_4 = arith.constant 5.000000e-01 : f32
    %9 = vector.broadcast %cst_4 : f32 to vector<8x128xf32>
    %10 = arith.mulf %9, %8 : vector<8x128xf32>
    %11 = arith.subf %6, %10 : vector<8x128xf32>
    %12 = arith.mulf %8, %11 : vector<8x128xf32>
    %13 = math.roundeven %3 : vector<8x128xf32>
    %14 = arith.subf %3, %13 : vector<8x128xf32>
    %15 = math.absf %14 : vector<8x128xf32>
    %c0_5 = arith.constant 0 : index
    %c0_6 = arith.constant 0 : index
    %c0_7 = arith.constant 0 : index
    %16 = vector.load %arg4[%c0_5, %c0_6, %c0_7] : memref<1x1x128xf32, #tpu.memory_space<vmem>>, vector<1x1x128xf32>
    %17 = vector.shape_cast %16 : vector<1x1x128xf32> to vector<1x128xf32>
    %cst_8 = arith.constant dense<0.000000e+00> : vector<128xf32>
    %18 = vector.multi_reduction <add>, %12, %cst_8 [0] : vector<8x128xf32> to vector<128xf32>
    %19 = vector.shape_cast %18 : vector<128xf32> to vector<1x128xf32>
    %20 = arith.addf %17, %19 : vector<1x128xf32>
    %c0_9 = arith.constant 0 : index
    %c0_10 = arith.constant 0 : index
    %c0_11 = arith.constant 0 : index
    %21 = vector.load %arg4[%c0_9, %c0_10, %c0_11] : memref<1x1x128xf32, #tpu.memory_space<vmem>>, vector<1x1x128xf32>
    %22 = vector.shape_cast %21 : vector<1x1x128xf32> to vector<1x128xf32>
    %23 = vector.shape_cast %20 : vector<1x128xf32> to vector<1x1x128xf32>
    tpu.vector_store %arg4[%c0_9, %c0_10, %c0_11], %23 {strides = array<i32>} : memref<1x1x128xf32, #tpu.memory_space<vmem>>, vector<1x1x128xf32>,
    %c0_12 = arith.constant 0 : index
    %c0_13 = arith.constant 0 : index
    %c0_14 = arith.constant 0 : index
    %24 = vector.load %arg5[%c0_12, %c0_13, %c0_14] : memref<1x1x128xf32, #tpu.memory_space<vmem>>, vector<1x1x128xf32>
    %25 = vector.shape_cast %24 : vector<1x1x128xf32> to vector<1x128xf32>
    %cst_15 = arith.constant dense<0.000000e+00> : vector<128xf32>
    %26 = vector.multi_reduction <add>, %15, %cst_15 [0] : vector<8x128xf32> to vector<128xf32>
    %27 = vector.shape_cast %26 : vector<128xf32> to vector<1x128xf32>
    %28 = arith.addf %25, %27 : vector<1x128xf32>
    %c0_16 = arith.constant 0 : index
    %c0_17 = arith.constant 0 : index
    %c0_18 = arith.constant 0 : index
    %29 = vector.load %arg5[%c0_16, %c0_17, %c0_18] : memref<1x1x128xf32, #tpu.memory_space<vmem>>, vector<1x1x128xf32>
    %30 = vector.shape_cast %29 : vector<1x1x128xf32> to vector<1x128xf32>
    %31 = vector.shape_cast %28 : vector<1x128xf32> to vector<1x1x128xf32>
    tpu.vector_store %arg5[%c0_16, %c0_17, %c0_18], %31 {strides = array<i32>} : memref<1x1x128xf32, #tpu.memory_space<vmem>>, vector<1x1x128xf32>,
    return
  }
  func.func @transform_0(%arg0: i32, %arg1: i32) -> (i32, i32) {
    %c1_i32 = arith.constant 1 : i32
    %0 = arith.muli %arg0, %c1_i32 : i32
    %1 = arith.addi %0, %arg1 : i32
    %c0_i32 = arith.constant 0 : i32
    %c0_i32_0 = arith.constant 0 : i32
    return %1, %c0_i32 : i32, i32
  }
  func.func @transform_1(%arg0: i32, %arg1: i32) -> (i32, i32) {
    %c1_i32 = arith.constant 1 : i32
    %0 = arith.muli %arg0, %c1_i32 : i32
    %1 = arith.addi %0, %arg1 : i32
    %c0_i32 = arith.constant 0 : i32
    %c0_i32_0 = arith.constant 0 : i32
    return %1, %c0_i32 : i32, i32
  }
  func.func @transform_2(%arg0: i32, %arg1: i32) -> (i32, i32, i32) {
    %c0_i32 = arith.constant 0 : i32
    %c0_i32_0 = arith.constant 0 : i32
    %c0_i32_1 = arith.constant 0 : i32
    return %arg0, %c0_i32, %c0_i32_0 : i32, i32, i32
  }
  func.func @transform_3(%arg0: i32, %arg1: i32) -> (i32, i32, i32) {
    %c0_i32 = arith.constant 0 : i32
    %c0_i32_0 = arith.constant 0 : i32
    %c0_i32_1 = arith.constant 0 : i32
    return %arg0, %c0_i32, %c0_i32_0 : i32, i32, i32
  }
}

</mosaic_0001>

<bundles_post_ra>
// kernel: tpu_custom_call.1
= control target key start
LH: loop header
LB: loop body
LE: loop exit
PB: predicated region body
PF: predicated region fallthrough
CT: control target
= control target key end

     0   :  { %9 = vsyncpa [#allocation3], 0  ;;  %s1001_s0 = inlined_call_operand.hbm [shape: f32[16,128], index: 0, kind: input, shape index: {}]   ;;  %s1002_s1 = inlined_call_operand.hbm [shape: f32[16,128], index: 1, kind: input, shape index: {}]   ;;  %s1003_s2 = inlined_call_operand.hbm [shape: f32[2,1,128], index: 2, kind: output, shape index: {0}]   ;;  %s1004_s3 = inlined_call_operand.hbm [shape: f32[2,1,128], index: 3, kind: output, shape index: {1}]  }
   0x1   :  { %11 = vsyncpa [#allocation3 + $0x1], 0 }
   0x2   :  { %12 = vsyncpa [#allocation6], 0 }
   0x3   :  { %14 = vsyncpa [#allocation6 + $0x1], 0 }
   0x4   :  { %15 = vsyncpa [#allocation4], 0 }
   0x5   :  { %17 = vsyncpa [#allocation4 + $0x1], 0 }
   0x6   :  { %18 = vsyncpa [#allocation9], 0 }
   0x7   :  { %20 = vsyncpa [#allocation9 + $0x1], 0  ;;  %s738_s12 = smov 0   ;;  %s740_s13 = smov 0  }
   0x8   :  { %s742_s14 = smov 0   ;;  %s744_s15 = smov 0  }
   0x9   :  { %s746_s16 = smov 0   ;;  %s748_s17 = smov 0  }
   0xa LB: > { %s444_s18 = sadd.s32 4294967295, %s711_s17   ;;  %s445_s19 = sadd.s32 4294967294, %s711_s17   ;;  %s711_s17 = sphi %s748_s17, %s26_s17   ;;  %s707_s16 = sphi %s746_s16, %s1024_s16   ;;  %s703_s15 = sphi %s744_s15, %s1023_s15   ;;  %s699_s14 = sphi %s742_s14, %s1022_s14   ;;  %s695_s13 = sphi %s740_s13, %s1021_s13   ;;  %s691_s12 = sphi %s738_s12, %s1020_s12  }
   0xb   : > { %s38_s20 = sadd.s32 1, %s707_s16  ;;  %s47_s21 = sadd.s32 1, %s699_s14 }
   0xc   : > { %p40_p0 = scmp.ge.s32.totalorder %s38_s20, 2  ;;  %p54_p1 = scmp.ne.s32.totalorder %s699_s14, %s695_s13 }
   0xd   : > { %p55_p2 = scmp.eq.s32.totalorder %s711_s17, 0  ;;  %p60_p3 = scmp.ne.s32.totalorder %s695_s13, %s691_s12 }
   0xe   : > { %s1026_s20 = smov (%p40_p0, %s38_s20), 0  ;;  %p61_p5 = scmp.eq.s32.totalorder %s444_s18, 0 }
   0xf   : > { %p779_p4 = por %p55_p2, %p54_p1  ;;  %s44_s23 = ssub.s32 %s707_s16, %s1026_s20 }
  0x10   : > { %p112_p6 = scmp.eq.s32.totalorder %s444_s18, 1  ;;  %p45_p7 = scmp.eq.s32.totalorder %s44_s23, 0 }
  0x11   : > { %p785_p8 = por %p61_p5, %p60_p3  ;;  %p118_p10 = scmp.eq.s32.totalorder %s445_s19, 1 }
  0x12   : > { %p789_p9 = por %p112_p6, %p54_p1  ;;  %p482_p13 = scmp.lt.s32.totalorder %s711_s17, 2 }
  0x13   : > { %s1008_s24 = scalar_select %p785_p8, 1, 0 }
  0x14   : > { %s1009_s25 = scalar_select %p789_p9, 1, 0 }
  0x15   : > { %s794_s26 = scalar_select %p45_p7, %s699_s14, %s47_s21  }
  0x16   : > { %p796_p11 = por %p118_p10, %p60_p3  ;;  %s803_s28 = sand.u32 1, %s699_s14  }
  0x17   : > { %s448_s29 = sshll.u32 %s803_s28, 3  ;;  %s449_s30 = sshll.u32 %s707_s16, 7 }
  0x18   : > { %s1010_s27 = scalar_select %p796_p11, 1, 0 }
  0x19   : > { %s812_s6 = scalar_lea.hbm %s1001_s0, %s449_s30  ;;  %s168_s7 = scalar_lea.vmem [#allocation2], %s448_s29 }
  0x1a   : > { %s176_s8 = sshll.u32 %s168_s7, 4  ;;  %p820_p0 = pnand %p482_p13, %p779_p4  ;;  %s816_s8 = int_to_ptr.vmem [resolvable:$true] %s176_s8 }
  0x1b   : > { %s165_s10 = scalar_lea.sflag [#allocation3], %s803_s28  ;;  %s533_s11 = scalar_lea.hbm %s812_s6, 128 }
  0x1c   : > { %p534_p3 = scmp.ne.s32.totalorder %s812_s6, %s533_s11  ;;  %p535_p5 = pneg %p820_p0 }
  0x1d   : > { %s538_s21 = scalar_lea.hbm %s1001_s0, 256  ;;  %p539_p4 = scmp.lt.u32.totalorder %s812_s6, %s1001_s0 }
  0x1e   : > { %p536_p6 = pnand %p535_p5, %p534_p3  ;;  %p540_p10 = scmp.lt.u32.totalorder %s538_s21, %s533_s11 }
  0x1f   : > { %p542_p12 = scmp.lt.u32.totalorder %s533_s11, %s812_s6 }
  0x20   : > { %p537_p7 = pneg %p536_p6  ;;  %p541_p13 = por %p540_p10, %p539_p4 }
  0x22   : > { %p543_p1 = por %p542_p12, %p541_p13 }
  0x24   : > { %p544_p2 = pnand %p543_p1, %p537_p7 }
  0x26   : > { %547 = shalt.err (!%p544_p2)
}
  0x27   : > { %s548_s4 = scalar_lea.vmem %s816_s8, 128  ;;  %s713_s5 = smov [#allocation2]  }
  0x28   : > { %p549_p3 = scmp.ne.s32.totalorder %s816_s8, %s548_s4  ;;  %s553_s7 = sshll.u32 %s713_s5, 4  ;;  %s554_s7 = int_to_ptr.vmem [resolvable:$false] %s553_s7 }
  0x29   : > { %s555_s18 = scalar_lea.vmem %s554_s7, 256  ;;  %p556_p9 = scmp.lt.s32.totalorder %s816_s8, %s554_s7 }
  0x2a   : > { %p551_p6 = pnand %p549_p3, %p535_p5  ;;  %p557_p4 = scmp.lt.s32.totalorder %s555_s18, %s548_s4 }
  0x2c   : > { %p552_p11 = pneg %p551_p6  ;;  %p558_p10 = por %p557_p4, %p556_p9 }
  0x2e   : > { %p559_p12 = pnand %p558_p10, %p552_p11 }
  0x30   : > { %562 = shalt.err (!%p559_p12)
}
  0x31   : > { %471 = dma.hbm_to_vmem [thread:$0]  (!%p820_p0), %s812_s6, 128, %s816_s8, %s165_s10  }
  0x32   : > { %p1012_p1 = scmp.lt.s32.totalorder %s711_s17, 3  ;;  %p1013_p2 = scmp.ge.s32.totalorder %s711_s17, 1 }
  0x33   : > { %s865_s22 = scalar_lea.hbm %s1002_s1, %s449_s30  ;;  %s187_s23 = scalar_lea.vmem [#allocation5], %s448_s29 }
  0x34   : > { %p856_p7 = pnand %p1013_p2, %p1012_p1  ;;  %s195_s4 = sshll.u32 %s187_s23, 4  ;;  %s196_s4 = int_to_ptr.vmem [resolvable:$true] %s195_s4 }
  0x35   : > { %s184_s6 = scalar_lea.sflag [#allocation6], %s803_s28  ;;  %s563_s8 = scalar_lea.hbm %s865_s22, 128 }
  0x36   : > { %s1014_s11 = scalar_select %p856_p7, 1, 0 }
  0x37   : > { %p564_p9 = scmp.ne.s32.totalorder %s865_s22, %s563_s8  ;;  %s568_s30 = scalar_lea.hbm %s1002_s1, 256 }
  0x38   : > { %p569_p3 = scmp.lt.u32.totalorder %s865_s22, %s1002_s1  ;;  %p570_p6 = scmp.lt.u32.totalorder %s568_s30, %s563_s8 }
  0x39   : > { %p566_p11 = pnand %p564_p9, %p535_p5  ;;  %p572_p10 = scmp.lt.u32.totalorder %s563_s8, %s865_s22 }
  0x3a   : > { %p571_p4 = por %p570_p6, %p569_p3 }
  0x3b   : > { %p567_p13 = pneg %p566_p11 }
  0x3c   : > { %p573_p12 = por %p572_p10, %p571_p4 }
  0x3e   : > { %p574_p1 = pnand %p573_p12, %p567_p13 }
  0x40   : > { %577 = shalt.err (!%p574_p1)
}
  0x41   : > { %s578_s28 = scalar_lea.vmem %s196_s4, 128  ;;  %s714_s29 = smov [#allocation5]  }
  0x42   : > { %p579_p2 = scmp.ne.s32.totalorder %s196_s4, %s578_s28  ;;  %s583_s19 = sshll.u32 %s714_s29, 4  ;;  %s584_s19 = int_to_ptr.vmem [resolvable:$false] %s583_s19 }
  0x43   : > { %s585_s21 = scalar_lea.vmem %s584_s19, 256  ;;  %p586_p8 = scmp.lt.s32.totalorder %s196_s4, %s584_s19 }
  0x44   : > { %p581_p9 = pnand %p579_p2, %p535_p5  ;;  %p587_p7 = scmp.lt.s32.totalorder %s585_s21, %s578_s28 }
  0x46   : > { %p582_p11 = pneg %p581_p9  ;;  %p588_p3 = por %p587_p7, %p586_p8 }
  0x48   : > { %p589_p6 = pnand %p588_p3, %p582_p11 }
  0x4a   : > { %592 = shalt.err (!%p589_p6)
}
  0x4b   : > { %474 = dma.hbm_to_vmem [thread:$0]  (!%p820_p0), %s865_s22, 128, %s196_s4, %s184_s6  }
  0x4c   : > { %p1015_p13 = scmp.ne.s32.totalorder %s1014_s11, 0 }
  0x4d   : > { %s892_s23 = sand.u32 (!%p1015_p13), 1, %s695_s13   ;;  %p1016_p5 = scmp.ne.s32.totalorder (!%p1015_p13), %s1008_s24, 0 }
  0x4e   : > { %204 = sbr.rel (%p1015_p13) target bundleno = 146 (0x92), region = 28  ;;  %s453_s8 = sshll.u32 (!%p1015_p13), %s892_s23, 3 }
  0x4f   : > { %s207_s10 = scalar_lea.sflag (!%p1015_p13), [#allocation3], %s892_s23  ;;  %s210_s5 = scalar_lea.vmem (!%p1015_p13), [#allocation2], %s453_s8 }
  0x55   : > { %674 = dma.done.wait (%p1016_p5), %s207_s10, 128  }
  0x56   : > { %676 = vsyncadd (%p1016_p5), %s207_s10, 4294967168  ;;  %s216_s9 = scalar_lea.sflag [#allocation6], %s892_s23  ;;  %s219_s22 = scalar_lea.vmem [#allocation5], %s453_s8 }
  0x57   : > { %678 = dma.done.wait (%p1016_p5), %s216_s9, 128  }
  0x58   : > { %680 = vsyncadd (%p1016_p5), %s216_s9, 4294967168  ;;  %s906_s11 = scalar_lea.vmem [#allocation7], %s892_s23  ;;  %v715_v0 = vmov 0.0   ;;  %s249_s4 = scalar_lea.vmem [#allocation8], %s892_s23  ;;  %v258_v1 = vld [vmem:[%s210_s5] sm:$0xff]  ;;  %v259_v2 = vld [vmem:[%s219_s22] sm:$0xff] }
  0x59   : > { %256 = vst [vmem:[%s906_s11] sm:$0x1] %v715_v0  ;;  %257 = vst [vmem:[%s249_s4] sm:$0x1] %v715_v0  ;;  %v260_v3 = vsub.f32 %v258_v1, %v259_v2  ;;  %v459_v4 = vround.rtne.f32 %v258_v1  ;;  %s455_s24 = sshll.u32 %s703_s15, 4  ;;  %s317_s6 = sshll.u32 %s249_s4, 4  ;;  %s918_s6 = int_to_ptr.vmem [resolvable:$true] %s317_s6 }
  0x5a   : > { %s916_s18 = scalar_lea.hbm %s1004_s3, %s455_s24  ;;  %s304_s28 = sshll.u32 %s906_s11, 4  ;;  %s953_s28 = int_to_ptr.vmem [resolvable:$true] %s304_s28 }
  0x5b   : > { %v261_v5 = vand.u32 2147483647, %v260_v3  ;;  %v267_v6 = vsub.f32 %v258_v1, %v459_v4  ;;  %s292_s29 = scalar_lea.sflag [#allocation9], %s892_s23  ;;  %s593_s19 = scalar_lea.vmem %s918_s6, 16 }
  0x5c   : > { %p594_p8 = scmp.ne.s32.totalorder %s918_s6, %s593_s19  ;;  %p1017_p0 = scmp.ne.s32.totalorder %s1009_s25, 0 }
  0x5d   : > { %v262_v7 = vmin.f32 %v261_v5, 1.0  ;;  %v268_v8 = vand.u32 2147483647, %v267_v6  ;;  %s716_s21 = smov [#allocation8]  }
  0x5e   : > { %p595_p7 = pnand %p594_p8, %p1017_p0  ;;  %s597_s8 = sshll.u32 %s716_s21, 4  ;;  %s598_s8 = int_to_ptr.vmem [resolvable:$false] %s597_s8 }
  0x5f   : > { %v263_v9 = vmul.f32 0.5, %v262_v7  ;;  %v279_v10 = vrot.slane %v268_v8, 4  ;;  %s599_s10 = scalar_lea.vmem %s598_s8, 32  ;;  %p600_p10 = scmp.lt.s32.totalorder %s918_s6, %s598_s8 }
  0x60   : > { %v278_v19 = vld [vmem:[%s249_s4] sm:$0x1]  ;;  %p596_p4 = pneg %p595_p7  ;;  %p601_p12 = scmp.lt.s32.totalorder %s599_s10, %s593_s19 }
  0x61   : > { %v264_v11 = vsub.f32 %v261_v5, %v263_v9  ;;  %v280_v12 = vadd.f32 %v279_v10, %v268_v8  ;;  %v269_v25 = vld [vmem:[%s906_s11] sm:$0x1] }
  0x62   : > { %p602_p1 = por %p601_p12, %p600_p10 }
  0x63   : > { %v265_v13 = vmul.f32 %v264_v11, %v262_v7  ;;  %v281_v14 = vrot.slane %v280_v12, 2 }
  0x64   : > { %p603_p2 = pnand %p602_p1, %p596_p4 }
  0x65   : > { %v270_v15 = vrot.slane %v265_v13, 4  ;;  %v282_v16 = vadd.f32 %v281_v14, %v280_v12 }
  0x67   : > { %v271_v17 = vadd.f32 %v270_v15, %v265_v13  ;;  %v283_v18 = vrot.slane %v282_v16, 1 }
  0x69   : > { %v272_v20 = vrot.slane %v271_v17, 2  ;;  %v284_v21 = vadd.f32 %v283_v18, %v282_v16 }
  0x6b   : > { %v273_v22 = vadd.f32 %v272_v20, %v271_v17  ;;  %v285_v23 = vadd.f32 %v284_v21, %v278_v19 }
  0x6d   : > { %v274_v24 = vrot.slane %v273_v22, 1  ;;  %286 = vst [vmem:[%s249_s4] sm:$0x1] %v285_v23 }
  0x6e   : > { %606 = shalt.err (!%p603_p2)
}
  0x6f   : > { %s607_s5 = scalar_lea.hbm %s916_s18, 16  ;;  %s611_s4 = scalar_lea.hbm %s1004_s3, 32 }
  0x70   : > { %p608_p9 = scmp.ne.s32.totalorder %s916_s18, %s607_s5  ;;  %p612_p6 = scmp.lt.u32.totalorder %s916_s18, %s1004_s3 }
  0x71   : > { %p613_p13 = scmp.lt.u32.totalorder %s611_s4, %s607_s5  ;;  %p615_p8 = scmp.lt.u32.totalorder %s607_s5, %s916_s18 }
  0x72   : > { %p609_p11 = pnand %p608_p9, %p1017_p0 }
  0x73   : > { %p614_p5 = por %p613_p13, %p612_p6 }
  0x74   : > { %p610_p3 = pneg %p609_p11 }
  0x75   : > { %p616_p7 = por %p615_p8, %p614_p5 }
  0x77   : > { %p617_p4 = pnand %p616_p7, %p610_p3 }
  0x79   : > { %620 = shalt.err (!%p617_p4)
}
  0x7a   : > { %465 = dma.vmem_to_hbm [thread:$0]  (%p1017_p0), %s918_s6, 16, %s916_s18, %s292_s29   ;;  %v275_v26 = vadd.f32 %v274_v24, %v273_v22 }
  0x7b   : > { %s949_s8 = scalar_lea.hbm %s1003_s2, %s455_s24  ;;  %s288_s10 = scalar_lea.sflag [#allocation4], %s892_s23 }
  0x7c   : > { %v276_v27 = vadd.f32 %v275_v26, %v269_v25  ;;  %s621_s5 = scalar_lea.vmem %s953_s28, 16  ;;  %s717_s6 = smov [#allocation7]  }
  0x7d   : > { %p622_p10 = scmp.ne.s32.totalorder %s953_s28, %s621_s5  ;;  %s625_s15 = sshll.u32 %s717_s6, 4  ;;  %s626_s15 = int_to_ptr.vmem [resolvable:$false] %s625_s15 }
  0x7e   : > { %277 = vst [vmem:[%s906_s11] sm:$0x1] %v276_v27  ;;  %s627_s18 = scalar_lea.vmem %s626_s15, 32  ;;  %p628_p2 = scmp.lt.s32.totalorder %s953_s28, %s626_s15 }
  0x7f   : > { %p623_p12 = pnand %p622_p10, %p1017_p0  ;;  %p629_p9 = scmp.lt.s32.totalorder %s627_s18, %s621_s5 }
  0x81   : > { %p624_p1 = pneg %p623_p12  ;;  %p630_p11 = por %p629_p9, %p628_p2 }
  0x83   : > { %p631_p3 = pnand %p630_p11, %p624_p1 }
  0x85   : > { %634 = shalt.err (!%p631_p3)
}
  0x86   : > { %s635_s23 = scalar_lea.hbm %s949_s8, 16  ;;  %s639_s29 = scalar_lea.hbm %s1003_s2, 32 }
  0x87   : > { %p636_p6 = scmp.ne.s32.totalorder %s949_s8, %s635_s23  ;;  %p640_p8 = scmp.lt.u32.totalorder %s949_s8, %s1003_s2 }
  0x88   : > { %p641_p7 = scmp.lt.u32.totalorder %s639_s29, %s635_s23  ;;  %p643_p10 = scmp.lt.u32.totalorder %s635_s23, %s949_s8 }
  0x89   : > { %p637_p13 = pnand %p636_p6, %p1017_p0 }
  0x8a   : > { %p642_p4 = por %p641_p7, %p640_p8 }
  0x8b   : > { %p638_p5 = pneg %p637_p13 }
  0x8c   : > { %p644_p12 = por %p643_p10, %p642_p4 }
  0x8e   : > { %p645_p1 = pnand %p644_p12, %p638_p5 }
  0x90   : > { %648 = shalt.err (!%p645_p1)
}
  0x91   : > { %464 = dma.vmem_to_hbm [thread:$0]  (%p1017_p0), %s953_s28, 16, %s949_s8, %s288_s10  }
  0x92 PF: > { %s329_s4 = sand.u32 1, %s691_s12   ;;  %p1018_p2 = scmp.ne.s32.totalorder %s1010_s27, 0 }
  0x93   : > { %p1019_p9 = scmp.ge.s32.totalorder %s711_s17, 2  ;;  %s330_s30 = scalar_lea.sflag [#allocation4], %s329_s4 }
  0x95   : > { %p476_p11 = pnand %p1019_p9, %p1018_p2 }
  0x97   : > { %682 = dma.done.wait (!%p476_p11), %s330_s30, 16  }
  0x98   : > { %684 = vsyncadd (!%p476_p11), %s330_s30, 4294967280  ;;  %s338_s7 = scalar_lea.sflag [#allocation9], %s329_s4 }
  0x99   : > { %686 = dma.done.wait (!%p476_p11), %s338_s7, 16  }
  0x9a   : > { %688 = vsyncadd (!%p476_p11), %s338_s7, 4294967280  ;;  %s26_s17 = sadd.s32 1, %s711_s17   ;;  %s1020_s12 = smov %s695_s13 }
  0x9b   : > { %p23_p3 = scmp.ge.s32.totalorder %s26_s17, 4   ;;  %s1021_s13 = smov %s699_s14 }
  0x9c   : > { %s1022_s14 = smov %s794_s26  ;;  %s1023_s15 = smov %s707_s16 }
  0x9d   : > { %s1024_s16 = smov %s1026_s20  ;;  %25 = sbr.rel (!%p23_p3) target bundleno = 10 (0xa), region = 107 }
  0xa4   :  { %342 = vsyncpa [#allocation3], 1 }
  0xa5   :  { %344 = vsyncpa [#allocation3 + $0x1], 1 }
  0xa6   :  { %345 = vsyncpa [#allocation6], 1 }
  0xa7   :  { %347 = vsyncpa [#allocation6 + $0x1], 1 }
  0xa8   :  { %348 = vsyncpa [#allocation4], 1 }
  0xa9   :  { %350 = vsyncpa [#allocation4 + $0x1], 1 }
  0xaa   :  { %351 = vsyncpa [#allocation9], 1 }
  0xab   :  { %353 = vsyncpa [#allocation9 + $0x1], 1 }

</bundles_post_ra>
